<compile_context>
chip_gen: v7x
topology: tpu7x:2x2x1
jax: 0.10.0
libtpu: 0.0.40
codegen_flags: <defaults>
</compile_context>

<pallas_src>
import math

import jax
import jax.numpy as jnp
from jax import lax
from jax.experimental import pallas as pl
from jax.experimental.pallas import tpu as pltpu


# ---------------------------------------------------------------------------
# Kernels
# ---------------------------------------------------------------------------

def _sep_fc_kernel_plain(x_ref, w_ref, o_ref):
    # x_ref: [P_BLK, N_BLK, c_in], w_ref: [P_BLK, c_in, c_out],
    # o_ref: [P_BLK, N_BLK, c_out]
    o_ref[...] = jnp.einsum(
        "pnc,pco->pno", x_ref[...], w_ref[...],
        preferred_element_type=jnp.float32,
    ).astype(o_ref.dtype)


def _sep_fc_kernel_norm(x_ref, w_ref, o_ref, wn_ref):
    # F.normalize(fc_bin, dim=1): each c_in-column divided by max(||.||_2, 1e-12),
    # implemented as w * rsqrt(max(sum(w*w), 1e-24)) (EUP rsqrt, no divide),
    # with the reduction/rsqrt always in f32 even when compute dtype is bf16.
    #
    # The weight block index does not change across the inner n grid axis, so
    # normalize only once per part-block (n_idx == 0) into VMEM scratch and
    # reuse it for the remaining n-tiles.
    #
    # NOTE: when p % p_blk != 0 the padded tail rows of w_ref are
    # uninitialized; any inf/NaN produced there only lands in output rows that
    # are masked at writeback.  Do not add cross-part reductions/debug_checks
    # over the full block.
    @pl.when(pl.program_id(1) == 0)
    def _():
        w = w_ref[...].astype(jnp.float32)
        ss = jnp.sum(w * w, axis=1, keepdims=True)            # [P_BLK, 1, c_out]
        wn_ref[...] = (w * lax.rsqrt(jnp.maximum(ss, 1e-24))).astype(wn_ref.dtype)

    o_ref[...] = jnp.einsum(
        "pnc,pco->pno", x_ref[...], wn_ref[...],
        preferred_element_type=jnp.float32,
    ).astype(o_ref.dtype)


# ---------------------------------------------------------------------------
# Wrapper
# ---------------------------------------------------------------------------

def separate_fcs(x, fc_bin, norm=False, *, compute_dtype=None,
                 input_layout="ncp", output_layout="ncp",
                 p_blk=None, n_blk=None):
    """
    SeparateFCs forward.

    x:      [n, c_in, p]  (input_layout="ncp", module contract)
            or [p, n, c_in] (input_layout="pnc", skips one HBM transpose)
    fc_bin: [p, c_in, c_out]
    returns [n, c_out, p] (output_layout="ncp") or [p, n, c_out] ("pnc").

    compute_dtype: e.g. jnp.bfloat16 to run the matmul (and weight reads) in
    bf16 with f32 accumulation.  None = keep input dtype (bit-faithful).
    """
    if input_layout == "ncp":
        n, c_in, p = x.shape
        # plain-JAX glue (one HBM round trip); pass "pnc" to avoid it entirely.
        x_pnc = jnp.transpose(x, (2, 0, 1))
    elif input_layout == "pnc":
        p, n, c_in = x.shape
        x_pnc = x
    else:
        raise ValueError(f"bad input_layout {input_layout!r}")

    p_w, c_in_w, c_out = fc_bin.shape
    assert p == p_w and c_in == c_in_w, (x.shape, fc_bin.shape)

    out_dtype = x.dtype
    if compute_dtype is not None:
        x_pnc = x_pnc.astype(compute_dtype)
        fc_bin = fc_bin.astype(compute_dtype)

    bx = jnp.dtype(x_pnc.dtype).itemsize
    bw = jnp.dtype(fc_bin.dtype).itemsize
    bo = jnp.dtype(out_dtype).itemsize

    # ---- chip-aware VMEM budget / TensorCore count ------------------------
    try:
        vmem_cap = int(pltpu.get_tpu_info().vmem_capacity_bytes)
    except Exception:  # pragma: no cover - conservative fallback
        vmem_cap = 64 * 1024 * 1024          # assume v7x-class (smallest VMEM)
    # v7x: 64 MiB VMEM per TC and 2 TCs per chip; v5e/v6e: 128 MiB, 1 TC.
    two_tensorcores = vmem_cap <= 96 * 1024 * 1024
    vmem_budget = (3 * vmem_cap) // 4        # ~48 MiB on v7x, ~96 MiB on v5e/v6e

    # ---- n tiling (second grid axis, only kicks in for large batches) -----
    if n_blk is None:
        n_blk = n if n <= 256 else 256       # multiple of 8 (f32) / 16 (bf16)
    n_steps = pl.cdiv(n, n_blk)

    # ---- part-block size from the VMEM budget ------------------------------
    # Double-buffered streamed tiles per part:
    per_part_stream = n_blk * c_in * bx + c_in * c_out * bw + n_blk * c_out * bo
    # Norm path extras per part (resident, not double-buffered):
    #   normalized-weight scratch + ~2 live f32 temporaries during normalize.
    per_part_extra = (c_in * c_out * bw + 2 * c_in * c_out * 4) if norm else 0
    if p_blk is None:
        p_blk = max(1, vmem_budget // (2 * per_part_stream + per_part_extra))
        if two_tensorcores and p >= 2:
            # keep >= 2 grid steps so both v7x TensorCores get work; on 1-TC
            # chips this would only add per-step overhead, so it is skipped.
            p_blk = min(p_blk, pl.cdiv(p, 2))
        p_blk = min(p_blk, p)
    p_steps = pl.cdiv(p, p_blk)
    # TODO(synk): if a single part's tiles ever exceed the VMEM budget (huge
    # c_in*c_out), add a c_out tile axis; unnecessary at this module's shapes.

    vmem_need = 2 * p_blk * per_part_stream + p_blk * per_part_extra + (4 << 20)
    vmem_limit = int(min(vmem_cap - (8 << 20), max(32 << 20, vmem_need)))

    # advisory cost estimate for XLA's scheduler
    flops = 2 * p * n * c_in * c_out + (3 * p * c_in * c_out if norm else 0)
    cost = pl.CostEstimate(
        flops=flops,
        transcendentals=(p * c_out if norm else 0),
        bytes_accessed=int(p * n * c_in * bx + p * c_in * c_out * bw
                           + p * n * c_out * bo),
    )

    in_specs = [
        pl.BlockSpec((p_blk, n_blk, c_in), lambda i, j: (i, j, 0)),
        pl.BlockSpec((p_blk, c_in, c_out), lambda i, j: (i, 0, 0)),
    ]
    out_spec = pl.BlockSpec((p_blk, n_blk, c_out), lambda i, j: (i, j, 0))

    if norm:
        kernel = _sep_fc_kernel_norm
        scratch_shapes = [pltpu.VMEM((p_blk, c_in, c_out), fc_bin.dtype)]
    else:
        kernel = _sep_fc_kernel_plain
        scratch_shapes = []

    out_pnc = pl.pallas_call(
        kernel,
        out_shape=jax.ShapeDtypeStruct((p, n, c_out), out_dtype),
        grid_spec=pltpu.PrefetchScalarGridSpec(
            num_scalar_prefetch=0,
            grid=(p_steps, n_steps),
            in_specs=in_specs,
            out_specs=out_spec,
            scratch_shapes=scratch_shapes,
        ),
        compiler_params=pltpu.CompilerParams(
            # n must stay "arbitrary": the norm path relies on n_idx==0 running
            # first within each part-block (weight normalized once, reused).
            dimension_semantics=("parallel", "arbitrary"),
            vmem_limit_bytes=vmem_limit,
        ),
        cost_estimate=cost,
    )(x_pnc, fc_bin)

    if output_layout == "ncp":
        # plain-JAX glue back to the module contract [n, c_out, p]; pass
        # output_layout="pnc" to skip this HBM round trip downstream.
        return jnp.transpose(out_pnc, (1, 2, 0))
    elif output_layout == "pnc":
        return out_pnc
    else:
        raise ValueError(f"bad output_layout {output_layout!r}")


def make_fc_bin(key, parts_num, in_channels, out_channels):
    # Deterministic xavier_uniform init (PyTorch fan convention for 3-D tensor:
    # fan_in = size(1)*receptive, fan_out = size(0)*receptive,
    # receptive = prod(dims[2:])).
    fan_in = in_channels * out_channels
    fan_out = parts_num * out_channels
    bound = math.sqrt(6.0 / (fan_in + fan_out))
    return jax.random.uniform(
        key, (parts_num, in_channels, out_channels),
        dtype=jnp.float32, minval=-bound, maxval=bound,
    )


if __name__ == "__main__":
    key = jax.random.PRNGKey(0)
    k1, k2, k3, k4 = jax.random.split(key, 4)

    # ---- Demo 1: module-contract layout, f32, small shapes ----------------
    n, c_in, c_out, p = 8, 128, 128, 4
    x = jax.random.normal(k1, (n, c_in, p), dtype=jnp.float32)
    fc_bin = make_fc_bin(k2, p, c_in, c_out)
    x_pnc = jnp.transpose(x, (2, 0, 1))

    out = jax.block_until_ready(separate_fcs(x, fc_bin, norm=False))
    ref = jnp.transpose(jnp.einsum("pnc,pco->pno", x_pnc, fc_bin), (1, 2, 0))
    assert out.shape == (n, c_out, p)
    assert jnp.allclose(out, ref, atol=1e-4, rtol=1e-4)

    out_n = jax.block_until_ready(separate_fcs(x, fc_bin, norm=True))
    w_nrm = fc_bin / jnp.maximum(
        jnp.sqrt(jnp.sum(fc_bin * fc_bin, axis=1, keepdims=True)), 1e-12)
    ref_n = jnp.transpose(jnp.einsum("pnc,pco->pno", x_pnc, w_nrm), (1, 2, 0))
    assert out_n.shape == (n, c_out, p)
    assert jnp.allclose(out_n, ref_n, atol=1e-4, rtol=1e-4)

    # ---- Demo 2: perf path — bf16 compute, transpose-free pnc layout,
    #              n-tiling (2 n-steps) with norm hoisted into VMEM scratch ---
    n2, p2 = 512, 4
    x2 = jax.random.normal(k3, (p2, n2, c_in), dtype=jnp.float32)   # [p, n, c]
    fc2 = make_fc_bin(k4, p2, c_in, c_out)

    out2 = jax.block_until_ready(separate_fcs(
        x2, fc2, norm=True, compute_dtype=jnp.bfloat16,
        input_layout="pnc", output_layout="pnc", n_blk=256))
    w2n = fc2 / jnp.maximum(
        jnp.sqrt(jnp.sum(fc2 * fc2, axis=1, keepdims=True)), 1e-12)
    ref2 = jnp.einsum("pnc,pco->pno", x2, w2n)
    assert out2.shape == (p2, n2, c_out)
    assert jnp.allclose(out2, ref2, atol=5e-2, rtol=5e-2)   # bf16 tolerance

    print("KERNEL_OK")
</pallas_src>

<mosaic_0001>
module attributes {stable_mosaic.version = 11 : i64} {
  func.func @_sep_fc_kernel_plain(%arg0: i32, %arg1: i32, %arg2: memref<2x8x128xf32, #tpu.memory_space<vmem>>, %arg3: memref<2x128x128xf32, #tpu.memory_space<vmem>>, %arg4: memref<2x8x128xf32, #tpu.memory_space<vmem>>) attributes {dimension_semantics = [#tpu.dimension_semantics<parallel>, #tpu.dimension_semantics<arbitrary>], iteration_bounds = array<i64: 2, 1>, scalar_prefetch = 0 : i64, scratch_operands = 0 : i64, tpu.core_type = #tpu.core_type<tc>, window_params = [{transform_indices = @transform_0, window_bounds = array<i64: 2, 8, 128>}, {transform_indices = @transform_1, window_bounds = array<i64: 2, 128, 128>}, {transform_indices = @transform_2, window_bounds = array<i64: 2, 8, 128>}]} {
    %c0 = arith.constant 0 : index
    %c0_0 = arith.constant 0 : index
    %c0_1 = arith.constant 0 : index
    %0 = vector.load %arg2[%c0, %c0_0, %c0_1] : memref<2x8x128xf32, #tpu.memory_space<vmem>>, vector<2x8x128xf32>
    %c0_2 = arith.constant 0 : index
    %c0_3 = arith.constant 0 : index
    %c0_4 = arith.constant 0 : index
    %1 = vector.load %arg3[%c0_2, %c0_3, %c0_4] : memref<2x128x128xf32, #tpu.memory_space<vmem>>, vector<2x128x128xf32>
    "tpu.trace_start"() <{level = 10 : i32, message = "pnc,pco->pno"}> : () -> ()
    %cst = arith.constant dense<0.000000e+00> : vector<2x8x128xf32>
    %2 = tpu.matmul %0, %1, %cst {dimension_numbers = #tpu.dot_dimension_numbers<[2], [1], [1], [2], [0, 0, 0, 1, 1, 2], [0], [0]>} : vector<2x8x128xf32>, vector<2x128x128xf32>, vector<2x8x128xf32> -> vector<2x8x128xf32>
    "tpu.trace_stop"() : () -> ()
    %c0_5 = arith.constant 0 : index
    %c0_6 = arith.constant 0 : index
    %c0_7 = arith.constant 0 : index
    %3 = vector.load %arg4[%c0_5, %c0_6, %c0_7] : memref<2x8x128xf32, #tpu.memory_space<vmem>>, vector<2x8x128xf32>
    tpu.vector_store %arg4[%c0_5, %c0_6, %c0_7], %2 {strides = array<i32>} : memref<2x8x128xf32, #tpu.memory_space<vmem>>, vector<2x8x128xf32>,
    return
  }
  func.func @transform_0(%arg0: i32, %arg1: i32) -> (i32, i32, i32) {
    %c0_i32 = arith.constant 0 : i32
    %c0_i32_0 = arith.constant 0 : i32
    return %arg0, %arg1, %c0_i32 : i32, i32, i32
  }
  func.func @transform_1(%arg0: i32, %arg1: i32) -> (i32, i32, i32) {
    %c0_i32 = arith.constant 0 : i32
    %c0_i32_0 = arith.constant 0 : i32
    %c0_i32_1 = arith.constant 0 : i32
    return %arg0, %c0_i32, %c0_i32_0 : i32, i32, i32
  }
  func.func @transform_2(%arg0: i32, %arg1: i32) -> (i32, i32, i32) {
    %c0_i32 = arith.constant 0 : i32
    %c0_i32_0 = arith.constant 0 : i32
    return %arg0, %arg1, %c0_i32 : i32, i32, i32
  }
}

</mosaic_0001>

<bundles_post_ra>
// kernel: tpu_custom_call.1
= control target key start
LH: loop header
LB: loop body
LE: loop exit
PB: predicated region body
PF: predicated region fallthrough
CT: control target
= control target key end

     0   :  { %7 = vsyncpa [#allocation3], 0  ;;  %s1234_s0 = inlined_call_operand.hbm [shape: f32[4,8,128], index: 0, kind: input, shape index: {}]   ;;  %s1235_s1 = inlined_call_operand.hbm [shape: f32[4,128,128], index: 1, kind: input, shape index: {}]   ;;  %s1236_s2 = inlined_call_operand.hbm [shape: f32[4,8,128], index: 2, kind: output, shape index: {}]  }
   0x1   :  { %9 = vsyncpa [#allocation3 + $0x1], 0 }
   0x2   :  { %10 = vsyncpa [#allocation6], 0 }
   0x3   :  { %12 = vsyncpa [#allocation6 + $0x1], 0 }
   0x4   :  { %13 = vsyncpa [#allocation4], 0 }
   0x5   :  { %15 = vsyncpa [#allocation4 + $0x1], 0  ;;  %s945_s9 = smov 0   ;;  %s947_s10 = smov 0  }
   0x6   :  { %s949_s11 = smov 0   ;;  %s951_s12 = smov 0  }
   0x7   :  { %s953_s13 = smov 0   ;;  %s955_s14 = smov 0  }
   0x8 LB: > { %s522_s15 = sadd.s32 4294967295, %s918_s14   ;;  %s523_s16 = sadd.s32 4294967294, %s918_s14   ;;  %s918_s14 = sphi %s955_s14, %s21_s14   ;;  %s914_s13 = sphi %s953_s13, %s1254_s13   ;;  %s910_s12 = sphi %s951_s12, %s1253_s12   ;;  %s906_s11 = sphi %s949_s11, %s1252_s11   ;;  %s902_s10 = sphi %s947_s10, %s1251_s10   ;;  %s898_s9 = sphi %s945_s9, %s1250_s9  }
   0x9   : > { %s33_s17 = sadd.s32 1, %s914_s13  ;;  %s42_s18 = sadd.s32 1, %s906_s11 }
   0xa   : > { %p35_p0 = scmp.ge.s32.totalorder %s33_s17, 2  ;;  %p49_p1 = scmp.ne.s32.totalorder %s906_s11, %s902_s10 }
   0xb   : > { %p50_p2 = scmp.eq.s32.totalorder %s918_s14, 0  ;;  %p55_p3 = scmp.ne.s32.totalorder %s902_s10, %s898_s9 }
   0xc   : > { %s1256_s17 = smov (%p35_p0, %s33_s17), 0  ;;  %p56_p5 = scmp.eq.s32.totalorder %s522_s15, 0 }
   0xd   : > { %p986_p4 = por %p50_p2, %p49_p1  ;;  %s37_s20 = ssub.s32 %s914_s13, %s1256_s17 }
   0xe   : > { %p107_p6 = scmp.eq.s32.totalorder %s522_s15, 1  ;;  %p40_p7 = scmp.eq.s32.totalorder %s37_s20, 0 }
   0xf   : > { %p992_p8 = por %p56_p5, %p55_p3  ;;  %p113_p10 = scmp.eq.s32.totalorder %s523_s16, 1 }
  0x10   : > { %p996_p9 = por %p107_p6, %p49_p1  ;;  %p715_p13 = scmp.lt.s32.totalorder %s918_s14, 2 }
  0x11   : > { %s1240_s21 = scalar_select %p992_p8, 1, 0 }
  0x12   : > { %s1241_s22 = scalar_select %p996_p9, 1, 0 }
  0x13   : > { %s1001_s23 = scalar_select %p40_p7, %s906_s11, %s42_s18  }
  0x14   : > { %p1003_p11 = por %p113_p10, %p55_p3  ;;  %s1010_s25 = sand.u32 1, %s906_s11  }
  0x15   : > { %s526_s26 = sshll.u32 %s1010_s25, 4  ;;  %s542_s27 = sshll.u32 %s914_s13, 8 }
  0x16   : > { %s1242_s24 = scalar_select %p1003_p11, 1, 0 }
  0x17   : > { %s1017_s30 = scalar_lea.hbm %s1234_s0, %s542_s27  ;;  %s137_s3 = scalar_lea.vmem [#allocation2], %s526_s26 }
  0x18   : > { %s145_s4 = sshll.u32 %s137_s3, 4  ;;  %p1023_p0 = pnand %p715_p13, %p986_p4  ;;  %s1019_s4 = int_to_ptr.vmem [resolvable:$true] %s145_s4 }
  0x19   : > { %s134_s6 = scalar_lea.sflag [#allocation3], %s1010_s25  ;;  %s772_s7 = scalar_lea.hbm %s1017_s30, 256 }
  0x1a   : > { %p773_p2 = scmp.ne.s32.totalorder %s1017_s30, %s772_s7  ;;  %p774_p3 = pneg %p1023_p0 }
  0x1b   : > { %s777_s16 = scalar_lea.hbm %s1234_s0, 512  ;;  %p778_p4 = scmp.lt.u32.totalorder %s1017_s30, %s1234_s0 }
  0x1c   : > { %p775_p5 = pnand %p774_p3, %p773_p2  ;;  %p779_p7 = scmp.lt.u32.totalorder %s777_s16, %s772_s7 }
  0x1d   : > { %p781_p13 = scmp.lt.u32.totalorder %s772_s7, %s1017_s30 }
  0x1e   : > { %p776_p6 = pneg %p775_p5  ;;  %p780_p10 = por %p779_p7, %p778_p4 }
  0x20   : > { %p782_p12 = por %p781_p13, %p780_p10 }
  0x22   : > { %p783_p1 = pnand %p782_p12, %p776_p6 }
  0x24   : > { %786 = shalt.err (!%p783_p1)
}
  0x25   : > { %s787_s20 = scalar_lea.vmem %s1019_s4, 256  ;;  %s920_s26 = smov [#allocation2]  }
  0x26   : > { %p788_p2 = scmp.ne.s32.totalorder %s1019_s4, %s787_s20  ;;  %s792_s27 = sshll.u32 %s920_s26, 4  ;;  %s793_s27 = int_to_ptr.vmem [resolvable:$false] %s792_s27 }
  0x27   : > { %s794_s28 = scalar_lea.vmem %s793_s27, 512  ;;  %p795_p9 = scmp.lt.s32.totalorder %s1019_s4, %s793_s27 }
  0x28   : > { %p790_p5 = pnand %p788_p2, %p774_p3  ;;  %p796_p4 = scmp.lt.s32.totalorder %s794_s28, %s787_s20 }
  0x2a   : > { %p791_p11 = pneg %p790_p5  ;;  %p797_p7 = por %p796_p4, %p795_p9 }
  0x2c   : > { %p798_p10 = pnand %p797_p7, %p791_p11 }
  0x2e   : > { %801 = shalt.err (!%p798_p10)
}
  0x2f   : > { %s921_s29 = smov 128   ;;  %s922_s3 = smov 8  }
  0x30   : > { %707 = dma.hbm_to_vmem [thread:$0]  (!%p1023_p0), %s1017_s30, 256, %s1019_s4, %s134_s6, %s921_s29, %s921_s29, %s922_s3  }
  0x31   : > { %p175_p9 = scmp.lt.s32.totalorder %s918_s14, 3  ;;  %s529_s7 = sshll.u32 %s1010_s25, 8 }
  0x32   : > { %s544_s8 = sshll.u32 %s914_s13, 12  ;;  %p1244_p11 = scmp.ge.s32.totalorder %s918_s14, 1 }
  0x33   : > { %s1071_s19 = scalar_lea.hbm %s1235_s1, %s544_s8  ;;  %s159_s20 = scalar_lea.vmem [#allocation5], %s529_s7 }
  0x34   : > { %p1064_p12 = pnand %p1244_p11, %p175_p9  ;;  %s167_s26 = sshll.u32 %s159_s20, 4  ;;  %s1073_s26 = int_to_ptr.vmem [resolvable:$true] %s167_s26 }
  0x35   : > { %s156_s30 = scalar_lea.sflag [#allocation6], %s1010_s25  ;;  %s802_s4 = scalar_lea.hbm %s1071_s19, 4096 }
  0x36   : > { %p803_p1 = scmp.ne.s32.totalorder %s1071_s19, %s802_s4  ;;  %s807_s28 = scalar_lea.hbm %s1235_s1, 8192 }
  0x37   : > { %p808_p2 = scmp.lt.u32.totalorder %s1071_s19, %s1235_s1  ;;  %p809_p5 = scmp.lt.u32.totalorder %s807_s28, %s802_s4 }
  0x38   : > { %p805_p6 = pnand %p803_p1, %p774_p3  ;;  %p811_p7 = scmp.lt.u32.totalorder %s802_s4, %s1071_s19 }
  0x39   : > { %p810_p4 = por %p809_p5, %p808_p2 }
  0x3a   : > { %p806_p13 = pneg %p805_p6 }
  0x3b   : > { %p812_p10 = por %p811_p7, %p810_p4 }
  0x3d   : > { %p813_p9 = pnand %p812_p10, %p806_p13 }
  0x3f   : > { %816 = shalt.err (!%p813_p9)
}
  0x40   : > { %s817_s7 = scalar_lea.vmem %s1073_s26, 4096  ;;  %s923_s18 = smov [#allocation5]  }
  0x41   : > { %p818_p11 = scmp.ne.s32.totalorder %s1073_s26, %s817_s7  ;;  %s822_s20 = sshll.u32 %s923_s18, 4  ;;  %s823_s20 = int_to_ptr.vmem [resolvable:$false] %s822_s20 }
  0x42   : > { %s824_s6 = scalar_lea.vmem %s823_s20, 8192  ;;  %p825_p8 = scmp.lt.s32.totalorder %s1073_s26, %s823_s20 }
  0x43   : > { %p820_p1 = pnand %p818_p11, %p774_p3  ;;  %p826_p2 = scmp.lt.s32.totalorder %s824_s6, %s817_s7 }
  0x45   : > { %p821_p6 = pneg %p820_p1  ;;  %p827_p5 = por %p826_p2, %p825_p8 }
  0x47   : > { %p828_p4 = pnand %p827_p5, %p821_p6 }
  0x49   : > { %831 = shalt.err (!%p828_p4)
}
  0x4a   : > { %710 = dma.hbm_to_vmem [thread:$0]  (!%p1023_p0), %s1071_s19, 4096, %s1073_s26, %s156_s30, %s921_s29, %s921_s29, %s922_s3  }
  0x4b   : > { %179 = sbr.rel (%p1064_p12) target bundleno = 348 (0x15c), region = 28  ;;  %s1107_s4 = sand.u32 (!%p1064_p12), 1, %s902_s10  }
  0x4c   : > { %s534_s27 = sshll.u32 (!%p1064_p12), %s1107_s4, 4  ;;  %s182_s5 = scalar_lea.sflag (!%p1064_p12), [#allocation3], %s1107_s4 }
  0x4d   : > { %s1113_s28 = scalar_lea.vmem (!%p1064_p12), [#allocation2], %s534_s27  ;;  %p1246_p8 = scmp.ne.s32.totalorder (!%p1064_p12), %s1240_s21, 0 }
  0x52   : > { %885 = dma.done.wait (%p1246_p8), %s182_s5, 256  }
  0x53   : > { %887 = vsyncadd (%p1246_p8), %s182_s5, 4294967040  ;;  %s535_s25 = sshll.u32 %s1107_s4, 8  ;;  %s191_s29 = scalar_lea.sflag [#allocation6], %s1107_s4 }
  0x54   : > { %s1121_s3 = scalar_lea.vmem [#allocation5], %s535_s25 }
  0x55   : > { %889 = dma.done.wait (%p1246_p8), %s191_s29, 4096  }
  0x56   : > { %891 = vsyncadd (%p1246_p8), %s191_s29, 4294963200  ;;  %v924_v0 = vmov 0.0|0.0   ;;  %vm925_vm0 = vmmov 0   ;;  %v926_v1 = vmov 0.0   ;;  %v225_v2 = vld [vmem:[%s1121_s3] sm:$0xff]  ;;  %v226_v3 = vld [vmem:[%s1121_s3 + $0x8] sm:$0xff] }
  0x57   : > { %650 = vmatprep.subr.bf16.mxu0 %v924_v0  ;;  %674 = vmatprep.subr.bf16.mxu1 %v924_v0  ;;  %v241_v4 = vld [vmem:[%s1121_s3 + $0x80] sm:$0xff]  ;;  %v651_v5 = vpack.c.bf16 %v226_v3, %v225_v2  ;;  %v242_v6 = vld [vmem:[%s1121_s3 + $0x88] sm:$0xff]  ;;  %v227_v7 = vld [vmem:[%s1121_s3 + $0x10] sm:$0xff]  ;;  %s219_s21 = scalar_lea.vmem [#allocation7], %s534_s27  ;;  %s545_s19 = sshll.u32 %s910_s12, 8 }
  0x58   : > { %612 = vmatprep.mubr.msk.f32.mxu0 %vm925_vm0, %v926_v1  ;;  %647 = vmatprep.mubr.msk.f32.mxu1 %vm925_vm0, %v926_v1  ;;  %v228_v8 = vld [vmem:[%s1121_s3 + $0x18] sm:$0xff]  ;;  %v675_v9 = vpack.c.bf16 %v242_v6, %v241_v4  ;;  %v243_v10 = vld [vmem:[%s1121_s3 + $0x90] sm:$0xff]  ;;  %v229_v14 = vld [vmem:[%s1121_s3 + $0x20] sm:$0xff]  ;;  %s414_s15 = sshll.u32 %s219_s21, 4  ;;  %s1185_s8 = scalar_lea.hbm %s1236_s2, %s545_s19  ;;  %s1180_s15 = int_to_ptr.vmem [resolvable:$true] %s414_s15 }
  0x59   : > { %v244_v11 = vld [vmem:[%s1121_s3 + $0x98] sm:$0xff]  ;;  %652 = vmatpush3.bf16.msra.mxu0 %v651_v5  ;;  %v654_v12 = vpack.c.bf16 %v228_v8, %v227_v7  ;;  %v230_v15 = vld [vmem:[%s1121_s3 + $0x28] sm:$0xff]  ;;  %v245_v16 = vld [vmem:[%s1121_s3 + $0xa0] sm:$0xff]  ;;  %s400_s16 = scalar_lea.sflag [#allocation4], %s1107_s4  ;;  %s832_s7 = scalar_lea.vmem %s1180_s15, 256 }
  0x5a   : > { %676 = vmatpush3.bf16.msra.mxu1 %v675_v9  ;;  %653 = vmatprep.subr.bf16.mxu0 %v924_v0  ;;  %v678_v13 = vpack.c.bf16 %v244_v11, %v243_v10  ;;  %v246_v17 = vld [vmem:[%s1121_s3 + $0xa8] sm:$0xff]  ;;  %v657_v18 = vpack.c.bf16 %v230_v15, %v229_v14  ;;  %v231_v20 = vld [vmem:[%s1121_s3 + $0x30] sm:$0xff]  ;;  %v232_v21 = vld [vmem:[%s1121_s3 + $0x38] sm:$0xff]  ;;  %p833_p0 = scmp.ne.s32.totalorder %s1180_s15, %s832_s7  ;;  %p1247_p3 = scmp.ne.s32.totalorder %s1241_s22, 0 }
  0x5b   : > { %677 = vmatprep.subr.bf16.mxu1 %v924_v0  ;;  %v681_v19 = vpack.c.bf16 %v246_v17, %v245_v16  ;;  %v247_v22 = vld [vmem:[%s1121_s3 + $0xb0] sm:$0xff]  ;;  %v248_v23 = vld [vmem:[%s1121_s3 + $0xb8] sm:$0xff]  ;;  %v660_v24 = vpack.c.bf16 %v232_v21, %v231_v20  ;;  %v233_v26 = vld [vmem:[%s1121_s3 + $0x40] sm:$0xff]  ;;  %s927_s12 = smov [#allocation7]  }
  0x5c   : > { %v684_v25 = vpack.c.bf16 %v248_v23, %v247_v22  ;;  %v234_v27 = vld [vmem:[%s1121_s3 + $0x48] sm:$0xff]  ;;  %v249_v28 = vld [vmem:[%s1121_s3 + $0xc0] sm:$0xff]  ;;  %v235_v32 = vld [vmem:[%s1121_s3 + $0x50] sm:$0xff]  ;;  %p834_p12 = pnand %p833_p0, %p1247_p3  ;;  %s836_s18 = sshll.u32 %s927_s12, 4  ;;  %s837_s18 = int_to_ptr.vmem [resolvable:$false] %s836_s18 }
  0x5d   : > { %655 = vmatpush3.bf16.msra.mxu0 %v654_v12  ;;  %v250_v29 = vld [vmem:[%s1121_s3 + $0xc8] sm:$0xff]  ;;  %v663_v30 = vpack.c.bf16 %v234_v27, %v233_v26  ;;  %v236_v33 = vld [vmem:[%s1121_s3 + $0x58] sm:$0xff]  ;;  %v251_v34 = vld [vmem:[%s1121_s3 + $0xd0] sm:$0xff]  ;;  %s838_s20 = scalar_lea.vmem %s837_s18, 512  ;;  %p839_p7 = scmp.lt.s32.totalorder %s1180_s15, %s837_s18 }
  0x5e   : > { %679 = vmatpush3.bf16.msra.mxu1 %v678_v13  ;;  %656 = vmatprep.subr.bf16.mxu0 %v924_v0  ;;  %v687_v31 = vpack.c.bf16 %v250_v29, %v249_v28  ;;  %v252_v35 = vld [vmem:[%s1121_s3 + $0xd8] sm:$0xff]  ;;  %v666_v36 = vpack.c.bf16 %v236_v33, %v235_v32  ;;  %v237_v38 = vld [vmem:[%s1121_s3 + $0x60] sm:$0xff]  ;;  %v238_v39 = vld [vmem:[%s1121_s3 + $0x68] sm:$0xff]  ;;  %p835_p13 = pneg %p834_p12  ;;  %p840_p10 = scmp.lt.s32.totalorder %s838_s20, %s832_s7 }
  0x5f   : > { %680 = vmatprep.subr.bf16.mxu1 %v924_v0  ;;  %v690_v37 = vpack.c.bf16 %v252_v35, %v251_v34  ;;  %v253_v40 = vld [vmem:[%s1121_s3 + $0xe0] sm:$0xff]  ;;  %v254_v41 = vld [vmem:[%s1121_s3 + $0xe8] sm:$0xff]  ;;  %v669_v42 = vpack.c.bf16 %v238_v39, %v237_v38  ;;  %v239_v44 = vld [vmem:[%s1121_s3 + $0x70] sm:$0xff] }
  0x60   : > { %v693_v43 = vpack.c.bf16 %v254_v41, %v253_v40  ;;  %v240_v45 = vld [vmem:[%s1121_s3 + $0x78] sm:$0xff]  ;;  %v255_v46 = vld [vmem:[%s1121_s3 + $0xf0] sm:$0xff]  ;;  %p841_p9 = por %p840_p10, %p839_p7 }
  0x61   : > { %658 = vmatpush3.bf16.msra.mxu0 %v657_v18  ;;  %v256_v47 = vld [vmem:[%s1121_s3 + $0xf8] sm:$0xff]  ;;  %v672_v48 = vpack.c.bf16 %v240_v45, %v239_v44  ;;  %v223_v50 = vld [vmem:[%s1113_s28] sm:$0xff] }
  0x62   : > { %682 = vmatpush3.bf16.msra.mxu1 %v681_v19  ;;  %659 = vmatprep.subr.bf16.mxu0 %v924_v0  ;;  %v696_v49 = vpack.c.bf16 %v256_v47, %v255_v46  ;;  %v224_v51 = vld [vmem:[%s1113_s28 + $0x8] sm:$0xff]  ;;  %p842_p11 = pnand %p841_p9, %p835_p13 }
  0x63   : > { %683 = vmatprep.subr.bf16.mxu1 %v924_v0 }
  0x65   : > { %661 = vmatpush3.bf16.msra.mxu0 %v660_v24 }
  0x66   : > { %685 = vmatpush3.bf16.msra.mxu1 %v684_v25  ;;  %662 = vmatprep.subr.bf16.mxu0 %v924_v0 }
  0x67   : > { %686 = vmatprep.subr.bf16.mxu1 %v924_v0 }
  0x69   : > { %664 = vmatpush3.bf16.msra.mxu0 %v663_v30 }
  0x6a   : > { %688 = vmatpush3.bf16.msra.mxu1 %v687_v31  ;;  %665 = vmatprep.subr.bf16.mxu0 %v924_v0 }
  0x6b   : > { %689 = vmatprep.subr.bf16.mxu1 %v924_v0 }
  0x6d   : > { %667 = vmatpush3.bf16.msra.mxu0 %v666_v36 }
  0x6e   : > { %691 = vmatpush3.bf16.msra.mxu1 %v690_v37  ;;  %668 = vmatprep.subr.bf16.mxu0 %v924_v0 }
  0x6f   : > { %692 = vmatprep.subr.bf16.mxu1 %v924_v0 }
  0x71   : > { %670 = vmatpush3.bf16.msra.mxu0 %v669_v42 }
  0x72   : > { %694 = vmatpush3.bf16.msra.mxu1 %v693_v43  ;;  %671 = vmatprep.subr.bf16.mxu0 %v924_v0 }
  0x73   : > { %695 = vmatprep.subr.bf16.mxu1 %v924_v0 }
  0x75   : > { %673 = vmatpush3.bf16.msra.mxu0 %v672_v48 }
  0x76   : > { %697 = vmatpush3.bf16.msra.mxu1 %v696_v49 }
  0x78   : > { %613 = vmatmul.mubr.f32.vlgmr.msra.gmra.mrb[0].mxu0 %v223_v50 }
  0x79   : > { %648 = vmatmul.mubr.f32.vlgmr.msra.gmra.mrb[0].mxu1 %v224_v51 }
 0x14b   : > { %v323_v52 = vpop.f32.mrb[0].mxu0 }
 0x14c   : > { %397 = vst [vmem:[%s219_s21] sm:$0xff] %v323_v52  ;;  %v393_v53 = vpop.f32.mrb[0].mxu1  ;;  %v614_v54 = vpop.f32.mrb[1].mxu0 }
 0x14d   : > { %398 = vst [vmem:[%s219_s21 + $0x8] sm:$0xff] %v393_v53  ;;  %v649_v55 = vpop.f32.mrb[1].mxu1 }
 0x14e   : > { %845 = shalt.err (!%p842_p11)
}
 0x14f   : > { %s846_s6 = scalar_lea.hbm %s1185_s8, 256  ;;  %s850_s28 = scalar_lea.hbm %s1236_s2, 512 }
 0x150   : > { %p847_p1 = scmp.ne.s32.totalorder %s1185_s8, %s846_s6  ;;  %p851_p5 = scmp.lt.u32.totalorder %s1185_s8, %s1236_s2 }
 0x151   : > { %p852_p4 = scmp.lt.u32.totalorder %s850_s28, %s846_s6  ;;  %p854_p0 = scmp.lt.u32.totalorder %s846_s6, %s1185_s8 }
 0x152   : > { %p848_p6 = pnand %p847_p1, %p1247_p3 }
 0x153   : > { %p853_p8 = por %p852_p4, %p851_p5 }
 0x154   : > { %p849_p2 = pneg %p848_p6 }
 0x155   : > { %p855_p12 = por %p854_p0, %p853_p8 }
 0x157   : > { %p856_p13 = pnand %p855_p12, %p849_p2 }
 0x159   : > { %859 = shalt.err (!%p856_p13)
}
 0x15a   : > { %s928_s3 = smov 128   ;;  %s929_s21 = smov 8  }
 0x15b   : > { %702 = dma.vmem_to_hbm [thread:$0]  (%p1247_p3), %s1180_s15, 256, %s1185_s8, %s400_s16, %s928_s3, %s928_s3, %s929_s21  }
 0x15c PF: > { %s429_s19 = sand.u32 1, %s898_s9   ;;  %p1248_p7 = scmp.ne.s32.totalorder %s1242_s24, 0 }
 0x15d   : > { %p1249_p10 = scmp.ge.s32.totalorder %s918_s14, 2  ;;  %s430_s26 = scalar_lea.sflag [#allocation4], %s429_s19 }
 0x15f   : > { %p712_p9 = pnand %p1249_p10, %p1248_p7 }
 0x161   : > { %893 = dma.done.wait (!%p712_p9), %s430_s26, 256  }
 0x162   : > { %895 = vsyncadd (!%p712_p9), %s430_s26, 4294967040  ;;  %s21_s14 = sadd.s32 1, %s918_s14   ;;  %s1250_s9 = smov %s902_s10 }
 0x163   : > { %p18_p11 = scmp.ge.s32.totalorder %s21_s14, 4   ;;  %s1251_s10 = smov %s906_s11 }
 0x164   : > { %s1252_s11 = smov %s1001_s23  ;;  %s1253_s12 = smov %s914_s13 }
 0x165   : > { %s1254_s13 = smov %s1256_s17  ;;  %20 = sbr.rel (!%p18_p11) target bundleno = 8 (0x8), region = 86 }
 0x16c   :  { %435 = vsyncpa [#allocation3], 1 }
 0x16d   :  { %437 = vsyncpa [#allocation3 + $0x1], 1 }
 0x16e   :  { %438 = vsyncpa [#allocation6], 1 }
 0x16f   :  { %440 = vsyncpa [#allocation6 + $0x1], 1 }
 0x170   :  { %441 = vsyncpa [#allocation4], 1 }
 0x171   :  { %443 = vsyncpa [#allocation4 + $0x1], 1 }

</bundles_post_ra>
